<compile_context>
chip_gen: v7x
topology: tpu7x:2x2x1
jax: 0.10.0
libtpu: 0.0.40
codegen_flags: <defaults>
</compile_context>

<pallas_src>
import jax
import jax.numpy as jnp
from jax.experimental import pallas as pl
from jax.experimental.pallas import tpu as pltpu


# ----------------------------- sizing helpers --------------------------------


def _chip_vmem():
    """Per-generation scoped-VMEM limit and tile budget (bytes)."""
    try:
        cap = pltpu.get_tpu_info().vmem_capacity_bytes
    except Exception:  # interpret mode / older jax: assume the smallest (v7x)
        cap = 64 * 1024 * 1024
    # ~80% of physical, minus headroom for compiler-internal scratch.
    vmem_limit = min(cap - (8 << 20), int(cap * 4) // 5)
    tile_budget = vmem_limit - (8 << 20)
    return vmem_limit, tile_budget


def _pick_row_tile(n, emb_p, tile_budget):
    """Largest row tile tm (multiple of 512/256/128/16) such that the
    double-buffered bf16 (tm, N) g tile + double-buffered f32 (tm, emb_p)
    output + resident bf16 (N, emb_p) h fit the per-call VMEM budget."""
    resident_h = n * emb_p * 2                      # bf16 h, resident full block
    per_row = 2 * (n * 2) + 2 * (emb_p * 4)         # g dbl-buf bf16 + out dbl-buf f32
    avail = tile_budget - resident_h
    cap = avail // per_row if avail > 0 else 0
    cap = max(16, min(cap, n))
    for align in (512, 256, 128, 16):
        if cap >= align:
            return (cap // align) * align
    return 16


# ----------------------------- kernels ---------------------------------------


def _linear_relu_kernel(x_ref, wt_ref, b_ref, o_ref):
    # o_tile = relu(x_tile @ Wt + b); executed once per row tile, once total.
    h = jnp.dot(x_ref[...], wt_ref[...], preferred_element_type=jnp.float32)
    o_ref[...] = jnp.maximum(h + b_ref[...], 0.0).astype(o_ref.dtype)


def _prop_kernel(h_ref, g_ref, o_ref):
    # o_tile = g_tile @ h : bf16 MXU inputs (no in-kernel cast), f32 accumulate.
    o_ref[...] = jnp.dot(g_ref[...], h_ref[...],
                         preferred_element_type=jnp.float32).astype(o_ref.dtype)


# ----------------------------- wrapper ----------------------------------------


def sgc_forward(x, weight, bias, g, k, *, row_tile=None):
    """x: (N, in_dim), weight: (emb_dim, in_dim) [nn.Linear layout],
    bias: (emb_dim,), g: (N, N) dense propagation matrix.
    Returns (N, emb_dim) float32."""
    n, in_dim = x.shape
    emb_dim = weight.shape[0]

    vmem_limit, tile_budget = _chip_vmem()

    # Lane-dense padding of the embedding dim (unmasked vst, full MXU columns).
    emb_p = ((max(emb_dim, 128) + 127) // 128) * 128

    if row_tile is not None:
        assert row_tile > 0 and row_tile % 16 == 0, "row_tile must be a multiple of 16"
        tm = row_tile
    else:
        tm = _pick_row_tile(n, emb_p, tile_budget)

    # Pad N up to a multiple of tm (zero rows/cols; sliced off at the end).
    n_p = ((n + tm - 1) // tm) * tm
    grid = (n_p // tm,)

    xf = x.astype(jnp.float32)
    x_p = jnp.zeros((n_p, in_dim), jnp.float32).at[:n, :].set(xf)
    wt_p = jnp.zeros((in_dim, emb_p), jnp.float32).at[:, :emb_dim].set(
        weight.T.astype(jnp.float32))
    b_p = jnp.zeros((1, emb_p), jnp.float32).at[0, :emb_dim].set(
        bias.astype(jnp.float32))
    g_p = jnp.zeros((n_p, n_p), jnp.bfloat16).at[:n, :n].set(g.astype(jnp.bfloat16))

    cparams = pltpu.CompilerParams(
        dimension_semantics=("parallel",),      # 2 TCs on v7x; free elsewhere
        vmem_limit_bytes=vmem_limit)

    row_spec = lambda bs: pl.BlockSpec(bs, lambda i: (i, 0))
    full_spec = lambda bs: pl.BlockSpec(bs, lambda i: (0, 0))

    # ---- linear + ReLU (computed exactly once; bf16 out when propagating) ----
    lin_dtype = jnp.bfloat16 if k > 0 else jnp.float32
    h = pl.pallas_call(
        _linear_relu_kernel,
        out_shape=jax.ShapeDtypeStruct((n_p, emb_p), lin_dtype),
        grid=grid,
        in_specs=[row_spec((tm, in_dim)),
                  full_spec((in_dim, emb_p)),
                  full_spec((1, emb_p))],
        out_specs=row_spec((tm, emb_p)),
        compiler_params=cparams,
        cost_estimate=pl.CostEstimate(
            flops=2 * n_p * in_dim * emb_p,
            transcendentals=0,
            bytes_accessed=4 * (n_p * in_dim + in_dim * emb_p + emb_p)
                           + n_p * emb_p * (2 if k > 0 else 4)),
    )(x_p, wt_p, b_p)

    # ---- k propagation rounds: h stays resident, g row tiles are streamed ----
    for r in range(k):
        out_dtype = jnp.float32 if r == k - 1 else jnp.bfloat16
        out_bytes = n_p * emb_p * (4 if r == k - 1 else 2)
        h = pl.pallas_call(
            _prop_kernel,
            out_shape=jax.ShapeDtypeStruct((n_p, emb_p), out_dtype),
            grid=grid,
            in_specs=[full_spec((n_p, emb_p)),      # resident bf16 h
                      row_spec((tm, n_p))],         # bf16 g row tile (dbl-buffered)
            out_specs=row_spec((tm, emb_p)),
            compiler_params=cparams,
            cost_estimate=pl.CostEstimate(
                flops=2 * n_p * n_p * emb_p,
                transcendentals=0,
                bytes_accessed=2 * n_p * n_p + 2 * n_p * emb_p + out_bytes),
        )(h, g_p)

    return h[:n, :emb_dim].astype(jnp.float32)


if __name__ == "__main__":
    # Small shapes consistent with the module's forward.
    N, IN_DIM, EMB_DIM, K = 64, 8, 32, 2

    key = jax.random.PRNGKey(0)
    kx, kw, kb, kg = jax.random.split(key, 4)

    x = jax.random.normal(kx, (N, IN_DIM), dtype=jnp.float32)
    # Deterministic "nn.Linear(in_dim, emb_dim)" parameters (synthetic init).
    weight = jax.random.normal(kw, (EMB_DIM, IN_DIM), dtype=jnp.float32) * 0.1
    bias = jax.random.normal(kb, (EMB_DIM,), dtype=jnp.float32) * 0.1
    # Dense adjacency / propagation matrix g (N x N).
    g = jax.random.uniform(kg, (N, N), dtype=jnp.float32) / N

    # Pure-JAX f32 reference.
    ref = jnp.maximum(x @ weight.T + bias, 0.0)
    for _ in range(K):
        ref = g @ ref

    # Force 4 row tiles (tm=16) so the tiled/pipelined path is exercised.
    out = jax.block_until_ready(sgc_forward(x, weight, bias, g, K, row_tile=16))
    assert out.shape == (N, EMB_DIM)
    # g / h stream as bf16 -> loosened tolerance vs the f32 reference.
    assert jnp.allclose(out, ref, atol=5e-3, rtol=2e-2), float(
        jnp.max(jnp.abs(out - ref)))

    # Auto tile selection (per-chip VMEM budget).
    out_auto = jax.block_until_ready(sgc_forward(x, weight, bias, g, K))
    assert jnp.allclose(out_auto, ref, atol=5e-3, rtol=2e-2)

    # Non-multiple-of-tile N exercises the zero-padding path.
    out_pad = jax.block_until_ready(
        sgc_forward(x[:50], weight, bias, g[:50, :50], K, row_tile=16))
    ref_pad = jnp.maximum(x[:50] @ weight.T + bias, 0.0)
    for _ in range(K):
        ref_pad = g[:50, :50] @ ref_pad
    assert jnp.allclose(out_pad, ref_pad, atol=5e-3, rtol=2e-2)

    # k == 0 degenerate path (linear + ReLU only), exact f32.
    out0 = jax.block_until_ready(sgc_forward(x, weight, bias, g, 0))
    ref0 = jnp.maximum(x @ weight.T + bias, 0.0)
    assert jnp.allclose(out0, ref0, atol=1e-5, rtol=1e-5)

    # NOTE: self.dropout is stored but never applied in the encoder's forward,
    # so no dropout here either.
    # TODO(synk): sparse=True branch uses a DGL graph (u_mul_e / sum message
    # passing); only the dense (sparse=False) path is implemented.
    # TODO(synk): Encoder-level orchestration (augmentor1/augmentor2 callables,
    # target-encoder deepcopy/EMA update, predictor BatchNorm1d/PReLU/Dropout
    # head) is host-level parameter/training logic with no single fixed forward
    # op here; only the underlying graph-encoder forward is kernelized.
    print("KERNEL_OK")
</pallas_src>

<mosaic_0001>
module attributes {stable_mosaic.version = 11 : i64} {
  func.func @_linear_relu_kernel(%arg0: i32, %arg1: memref<16x8xf32, #tpu.memory_space<vmem>>, %arg2: memref<8x128xf32, #tpu.memory_space<vmem>>, %arg3: memref<1x128xf32, #tpu.memory_space<vmem>>, %arg4: memref<16x128xbf16, #tpu.memory_space<vmem>>) attributes {dimension_semantics = [#tpu.dimension_semantics<parallel>], iteration_bounds = array<i64: 4>, scalar_prefetch = 0 : i64, scratch_operands = 0 : i64, tpu.core_type = #tpu.core_type<tc>, window_params = [{transform_indices = @transform_0, window_bounds = array<i64: 16, 8>}, {pipeline_mode = #tpu.pipeline_mode<synchronous>, transform_indices = @transform_1, window_bounds = array<i64: 8, 128>}, {pipeline_mode = #tpu.pipeline_mode<synchronous>, transform_indices = @transform_2, window_bounds = array<i64: 1, 128>}, {transform_indices = @transform_3, window_bounds = array<i64: 16, 128>}]} {
    %c0 = arith.constant 0 : index
    %c0_0 = arith.constant 0 : index
    %0 = vector.load %arg1[%c0, %c0_0] : memref<16x8xf32, #tpu.memory_space<vmem>>, vector<16x8xf32>
    %c0_1 = arith.constant 0 : index
    %c0_2 = arith.constant 0 : index
    %1 = vector.load %arg2[%c0_1, %c0_2] : memref<8x128xf32, #tpu.memory_space<vmem>>, vector<8x128xf32>
    %cst = arith.constant dense<0.000000e+00> : vector<16x128xf32>
    %2 = tpu.matmul %0, %1, %cst {dimension_numbers = #tpu.dot_dimension_numbers<[1], [0], [0], [1], [0, 0, 1, 1], [], []>} : vector<16x8xf32>, vector<8x128xf32>, vector<16x128xf32> -> vector<16x128xf32>
    %c0_3 = arith.constant 0 : index
    %c0_4 = arith.constant 0 : index
    %3 = vector.load %arg3[%c0_3, %c0_4] : memref<1x128xf32, #tpu.memory_space<vmem>>, vector<1x128xf32>
    %4 = vector.broadcast %3 : vector<1x128xf32> to vector<16x128xf32>
    %5 = arith.addf %2, %4 : vector<16x128xf32>
    %cst_5 = arith.constant 0.000000e+00 : f32
    %6 = vector.broadcast %cst_5 : f32 to vector<16x128xf32>
    %7 = arith.maximumf %5, %6 : vector<16x128xf32>
    %8 = arith.truncf %7 : vector<16x128xf32> to vector<16x128xbf16>
    %c0_6 = arith.constant 0 : index
    %c0_7 = arith.constant 0 : index
    %9 = vector.load %arg4[%c0_6, %c0_7] : memref<16x128xbf16, #tpu.memory_space<vmem>>, vector<16x128xbf16>
    tpu.vector_store %arg4[%c0_6, %c0_7], %8 {strides = array<i32>} : memref<16x128xbf16, #tpu.memory_space<vmem>>, vector<16x128xbf16>,
    return
  }
  func.func @transform_0(%arg0: i32) -> (i32, i32) {
    %c0_i32 = arith.constant 0 : i32
    %c0_i32_0 = arith.constant 0 : i32
    return %arg0, %c0_i32 : i32, i32
  }
  func.func @transform_1(%arg0: i32) -> (i32, i32) {
    %c0_i32 = arith.constant 0 : i32
    %c0_i32_0 = arith.constant 0 : i32
    %c0_i32_1 = arith.constant 0 : i32
    return %c0_i32, %c0_i32_0 : i32, i32
  }
  func.func @transform_2(%arg0: i32) -> (i32, i32) {
    %c0_i32 = arith.constant 0 : i32
    %c0_i32_0 = arith.constant 0 : i32
    %c0_i32_1 = arith.constant 0 : i32
    return %c0_i32, %c0_i32_0 : i32, i32
  }
  func.func @transform_3(%arg0: i32) -> (i32, i32) {
    %c0_i32 = arith.constant 0 : i32
    %c0_i32_0 = arith.constant 0 : i32
    return %arg0, %c0_i32 : i32, i32
  }
}

</mosaic_0001>

<bundles_post_ra>
// kernel: tpu_custom_call.1
= control target key start
LH: loop header
LB: loop body
LE: loop exit
PB: predicated region body
PF: predicated region fallthrough
CT: control target
= control target key end

     0   :  { %8 = vsyncpa [#allocation3], 0  ;;  %s621_s0 = inlined_call_operand.vmem [shape: f32[64,8], index: 0, kind: input, shape index: {}]   ;;  %s622_s1 = inlined_call_operand.vmem [shape: f32[8,128], index: 1, kind: input, shape index: {}]   ;;  %s623_s2 = inlined_call_operand.vmem [shape: f32[1,128], index: 2, kind: input, shape index: {}]   ;;  %s624_s3 = inlined_call_operand.hbm [shape: bf16[64,128], index: 3, kind: output, shape index: {}]  }
   0x1   :  { %10 = vsyncpa [#allocation3 + $0x1], 0  ;;  %s513_s12 = smov 0   ;;  %s515_s13 = smov 0  }
   0x2   :  { %s517_s14 = smov 0   ;;  %s519_s15 = smov 0  }
   0x3 LB: > { %s534_s16 = sadd.s32 4294967295, %s488_s15   ;;  %s352_s17 = sadd.s32 4294967294, %s488_s15   ;;  %s488_s15 = sphi %s519_s15, %s630_s15   ;;  %s484_s14 = sphi %s517_s14, %s629_s14   ;;  %s480_s13 = sphi %s515_s13, %s628_s13   ;;  %s476_s12 = sphi %s513_s12, %s627_s12  }
   0x4   : > { %s538_s18 = sadd.s32 1, %s488_s15   ;;  %s91_s19 = sadd.s32 1, %s484_s14 }
   0x5   : > { %s88_s20 = ssub.s32 %s488_s15, %s538_s18  ;;  %p101_p0 = scmp.ne.s32.totalorder %s484_s14, %s480_s13 }
   0x6   : > { %p89_p1 = scmp.eq.s32.totalorder %s88_s20, 0  ;;  %p102_p2 = scmp.eq.s32.totalorder %s534_s16, 3 }
   0x7   : > { %p107_p3 = scmp.ne.s32.totalorder %s480_s13, %s476_s12  ;;  %p108_p4 = scmp.eq.s32.totalorder %s352_s17, 3 }
   0x8   : > { %s549_s21 = scalar_select %p89_p1, %s484_s14, %s91_s19  }
   0x9   : > { %p551_p5 = por %p102_p2, %p101_p0  ;;  %p555_p6 = por %p108_p4, %p107_p3 }
   0xa   : > { %p355_p7 = scmp.ge.s32.totalorder %s488_s15, 1  ;;  %p141_p8 = scmp.lt.s32.totalorder %s488_s15, 5 }
   0xc   : > { %p142_p9 = pnand %p355_p7, %p141_p8 }
   0xd   : > { %v174_v0 = vld [vmem:[%s622_s1] sm:$0xff] (!%p142_p9)  ;;  %s357_s26 = sshll.u32 (!%p142_p9), %s534_s16, 1  ;;  %vm182_vm0 = vcmask (!%p142_p9), 64512   ;;  %s162_s4 = sand.u32 (!%p142_p9), 1, %s480_s13  }
   0xe   : > { %145 = sbr.rel (%p142_p9) target bundleno = 260 (0x104), region = 32  ;;  %380 = vmatprep.subr.mxu0 (!%p142_p9), %v174_v0  ;;  %p166_p10 = scmp.lt.s32.totalorder (!%p142_p9), %s357_s26, 7  ;;  %v359_v3 = vld [vmem:[%s623_s2] ss:$0 sm:$0xff] (!%p142_p9) }
   0xf   : > { %381 = vmatpush3.msra.mxu0 (!%p142_p9), %v174_v0  ;;  %s356_s5 = sshll.u32 (!%p142_p9), %s162_s4, 3  ;;  %s371_s10 = sshll.u32 (!%p142_p9), %s534_s16, 7 }
  0x10   : > { %s164_s8 = scalar_lea.vmem (!%p142_p9), [#allocation2], %s356_s5  ;;  %s578_s19 = scalar_lea.hbm (!%p142_p9), %s624_s3, %s371_s10 }
  0x11   : > { %s290_s9 = sshll.u32 (!%p142_p9), %s164_s8, 4  ;;  %s580_s20 = scalar_lea.sflag (!%p142_p9), [#allocation3], %s162_s4  ;;  %s573_s9 = int_to_ptr.vmem [resolvable:$true] %s290_s9 }
  0x12   : > { %s426_s24 = scalar_lea.vmem (!%p142_p9), %s573_s9, 128  ;;  %s490_s16 = smov (!%p142_p9), [#allocation2]  }
  0x13   : > { %p427_p11 = scmp.ne.s32.totalorder (!%p142_p9), %s573_s9, %s426_s24  ;;  %s430_s25 = sshll.u32 (!%p142_p9), %s490_s16, 4  ;;  %s431_s25 = int_to_ptr.vmem [resolvable:$false] %s430_s25 }
  0x14   : > { %p433_p0 = scmp.lt.s32.totalorder (!%p142_p9), %s573_s9, %s431_s25 }
  0x15   : > { %s632_s26 = smov (!%p166_p10, %s357_s26), 7  ;;  %p428_p12 = pnand %p427_p11, %p551_p5 }
  0x16   : > { %s358_s27 = sshll.u32 %s632_s26, 3  ;;  %s432_s26 = scalar_lea.vmem %s431_s25, 256 }
  0x17   : > { %s169_s30 = scalar_lea.vmem %s621_s0, %s358_s27  ;;  %p429_p13 = pneg %p428_p12 }
  0x18   : > { %v172_v1 = vld [vmem:[%s169_s30] sm:$0xff]  ;;  %v173_v2 = vld [vmem:[%s169_s30 + $0x8] sm:$0xff]  ;;  %p434_p1 = scmp.lt.s32.totalorder %s432_s26, %s426_s24 }
  0x19   : > { %382 = vmatprep.mubr.msk.f32.mxu0 %vm182_vm0, %v172_v1 }
  0x1a   : > { %383 = vmatmul.mubr.msk.f32.vlgmr.msra.gmra.mrb[0].mxu0 %vm182_vm0, %v173_v2  ;;  %p435_p2 = por %p434_p1, %p433_p0 }
  0x1c   : > { %p436_p3 = pnand %p435_p2, %p429_p13 }
  0xed   : > { %v384_v4 = vpop.f32.mrb[0].mxu0 }
  0xee   : > { %v261_v5 = vadd.f32 %v384_v4, %v359_v3  ;;  %v255_v6 = vpop.f32.mrb[1].mxu0 }
  0xef   : > { %v256_v7 = vadd.f32 %v359_v3, %v255_v6 }
  0xf0   : > { %v265_v8 = vmax.f32 %v261_v5, 0.0 }
  0xf1   : > { %v264_v9 = vmax.f32 %v256_v7, 0.0 }
  0xf3   : > { %v375_v10 = vpack.c.bf16 %v265_v8, %v264_v9 }
  0xf5   : > { %376 = vst [vmem:[%s164_s8] sm:$0xff] %v375_v10  }
  0xf6   : > { %439 = shalt.err (!%p436_p3)
}
  0xf7   : > { %s440_s27 = scalar_lea.hbm %s578_s19, 128  ;;  %s444_s30 = scalar_lea.hbm %s624_s3, 512 }
  0xf8   : > { %p441_p4 = scmp.ne.s32.totalorder %s578_s19, %s440_s27  ;;  %p445_p9 = scmp.lt.u32.totalorder %s578_s19, %s624_s3 }
  0xf9   : > { %p446_p10 = scmp.lt.u32.totalorder %s444_s30, %s440_s27  ;;  %p448_p12 = scmp.lt.u32.totalorder %s440_s27, %s578_s19 }
  0xfa   : > { %p442_p7 = pnand %p441_p4, %p551_p5 }
  0xfb   : > { %p447_p11 = por %p446_p10, %p445_p9 }
  0xfc   : > { %p443_p8 = pneg %p442_p7 }
  0xfd   : > { %p449_p13 = por %p448_p12, %p447_p11 }
  0xff   : > { %p450_p0 = pnand %p449_p13, %p443_p8 }
 0x101   : > { %453 = shalt.err (!%p450_p0)
}
 0x102   : > { %s491_s6 = smov 64   ;;  %s492_s7 = smov 4  }
 0x103   : > { %385 = dma.vmem_to_hbm [thread:$0]  (%p551_p5), %s573_s9, 128, %s578_s19, %s580_s20, %s491_s6, %s491_s6, %s492_s7  }
 0x104 PF: > { %p391_p1 = scmp.ge.s32.totalorder %s488_s15, 2  ;;  %s305_s8 = sand.u32 1, %s476_s12  }
 0x105   : > { %s306_s10 = scalar_lea.sflag [#allocation3], %s305_s8 }
 0x106   : > { %p388_p2 = pnand %p391_p1, %p555_p6 }
 0x108   : > { %471 = dma.done.wait (!%p388_p2), %s306_s10, 128  }
 0x109   : > { %473 = vsyncadd (!%p388_p2), %s306_s10, 4294967168  ;;  %p13_p3 = scmp.ge.s32.totalorder %s538_s18, 6   ;;  %s627_s12 = smov %s480_s13 }
 0x10a   : > { %s628_s13 = smov %s484_s14  ;;  %s629_s14 = smov %s549_s21 }
 0x10b   : > { %s630_s15 = smov %s538_s18  ;;  %15 = sbr.rel (!%p13_p3) target bundleno = 3 (0x3), region = 67 }
 0x112   :  { %311 = vsyncpa [#allocation3], 1 }
 0x113   :  { %313 = vsyncpa [#allocation3 + $0x1], 1 }

</bundles_post_ra>
